<compile_context>
chip_gen: v6e
topology: v6e:2x2x1
jax: 0.10.0
libtpu: 0.0.40
codegen_flags: <defaults>
</compile_context>

<pallas_src>
import functools
import math

import jax
import jax.numpy as jnp
from jax.experimental import pallas as pl
from jax.experimental.pallas import tpu as pltpu

LANES = 128
SUB = 8                       # sublanes per f32 vreg
CHUNK_ROWS = 512              # rows per in-kernel compute chunk (multiple of 8)
MAX_BLOCK_ROWS = 8192         # 4 MiB per f32 input block (16 MiB double-buffered)


def _hv_loss_kernel(src_ref, tar_ref, out_ref, *,
                    block_rows, chunk_rows, n_chunks,
                    rows_valid, full_blocks, blocks_per_core, needs_mask):
    c = pl.program_id(0)                       # core-split index ("parallel")
    i = pl.program_id(1)                       # block index within this core
    gb = c * blocks_per_core + i               # logical (unclamped) global block id

    @pl.when(i == 0)
    def _init():
        out_ref[0, 0 * SUB:1 * SUB, :] = jnp.full((SUB, LANES), jnp.inf, jnp.float32)
        out_ref[0, 1 * SUB:2 * SUB, :] = jnp.full((SUB, LANES), -jnp.inf, jnp.float32)
        out_ref[0, 2 * SUB:3 * SUB, :] = jnp.zeros((SUB, LANES), jnp.float32)
        out_ref[0, 3 * SUB:4 * SUB, :] = jnp.zeros((SUB, LANES), jnp.float32)

    sub_groups = chunk_rows // SUB

    def _chunk(k, carry, masked):
        mn, mx, sd2, std2 = carry
        off = k * chunk_rows
        start = off if isinstance(off, int) else pl.multiple_of(off, chunk_rows)
        s = src_ref[pl.ds(start, chunk_rows), :].astype(jnp.float32)
        t = tar_ref[pl.ds(start, chunk_rows), :].astype(jnp.float32)
        d = s - t
        d2 = d * d
        td2 = t * d2
        if masked:
            # Rows past `rows_valid` hold unspecified data: neutralize with
            # selects (never multiplies) so garbage NaN/Inf cannot leak.
            row = jax.lax.broadcasted_iota(jnp.int32, (chunk_rows, LANES), 0)
            grow = gb * block_rows + off + row
            valid = grow < rows_valid
            t_mn = jnp.where(valid, t, jnp.inf)
            t_mx = jnp.where(valid, t, -jnp.inf)
            d2 = jnp.where(valid, d2, jnp.float32(0.0))
            td2 = jnp.where(valid, td2, jnp.float32(0.0))
        else:
            t_mn = t
            t_mx = t
        # Reduce (chunk_rows, 128) -> (8, 128) by folding whole vregs onto the
        # leading axis: pure VPU work, no cross-lane (XLU) traffic.
        t_mn = t_mn.reshape(sub_groups, SUB, LANES)
        t_mx = t_mx.reshape(sub_groups, SUB, LANES)
        d2 = d2.reshape(sub_groups, SUB, LANES)
        td2 = td2.reshape(sub_groups, SUB, LANES)
        return (jnp.minimum(mn, jnp.min(t_mn, axis=0)),
                jnp.maximum(mx, jnp.max(t_mx, axis=0)),
                sd2 + jnp.sum(d2, axis=0),
                std2 + jnp.sum(td2, axis=0))

    def _sweep(masked):
        init = (jnp.full((SUB, LANES), jnp.inf, jnp.float32),
                jnp.full((SUB, LANES), -jnp.inf, jnp.float32),
                jnp.zeros((SUB, LANES), jnp.float32),
                jnp.zeros((SUB, LANES), jnp.float32))
        if n_chunks == 1:
            mn, mx, sd2, std2 = _chunk(0, init, masked)
        else:
            mn, mx, sd2, std2 = jax.lax.fori_loop(
                0, n_chunks, lambda k, cr: _chunk(k, cr, masked), init)
        # One read-modify-write of the resident output block per grid step.
        out_ref[0, 0 * SUB:1 * SUB, :] = jnp.minimum(out_ref[0, 0 * SUB:1 * SUB, :], mn)
        out_ref[0, 1 * SUB:2 * SUB, :] = jnp.maximum(out_ref[0, 1 * SUB:2 * SUB, :], mx)
        out_ref[0, 2 * SUB:3 * SUB, :] = out_ref[0, 2 * SUB:3 * SUB, :] + sd2
        out_ref[0, 3 * SUB:4 * SUB, :] = out_ref[0, 3 * SUB:4 * SUB, :] + std2

    if needs_mask:
        @pl.when(gb < full_blocks)
        def _full():            # fully-valid blocks: mask-free hot path
            _sweep(masked=False)

        @pl.when(gb >= full_blocks)
        def _ragged():          # ragged / phantom blocks: masked path
            _sweep(masked=True)
    else:
        _sweep(masked=False)


@jax.jit
def hv_loss(src, tar):
    """Weighted MSE matching HVLoss.forward. Returns a scalar float32."""
    assert src.shape == tar.shape
    n = int(math.prod(src.shape))
    assert n > 0

    src_f = jnp.reshape(src, (-1,))
    tar_f = jnp.reshape(tar, (-1,))

    rows = (n + LANES - 1) // LANES
    rows = max(rows, SUB)                    # at least one full (8,128) tile
    padded_len = rows * LANES
    if padded_len != n:
        # TODO(synk): for n % 128 != 0 this materializes one padded copy of
        # src/tar (an extra HBM pass); a fully copy-free path would need a 1-D
        # block layout. Pad value is a real tar element so padded elements are
        # neutral (diff == 0, tar min/max unchanged).
        pad = padded_len - n
        fill = tar_f[-1]
        tar_f = jnp.concatenate([tar_f, jnp.full((pad,), fill, tar_f.dtype)])
        src_f = jnp.concatenate([src_f, jnp.full((pad,), fill, src_f.dtype)])

    # Chunk / block sizing (all multiples of 8 sublanes, block <= rows).
    chunk_rows = min(CHUNK_ROWS, (rows // SUB) * SUB)
    block_rows = min(MAX_BLOCK_ROWS, (rows // chunk_rows) * chunk_rows)
    n_chunks = block_rows // chunk_rows
    total_blocks = -(-rows // block_rows)
    full_blocks = rows // block_rows
    last_block = total_blocks - 1

    # v7x: shard the stream across both TensorCores when there is enough work.
    # Even block counts avoid a wasted phantom step on single-core chips.
    if total_blocks >= 2 and (total_blocks % 2 == 0 or total_blocks >= 8):
        num_cores = 2
    else:
        num_cores = 1
    blocks_per_core = -(-total_blocks // num_cores)
    grid_blocks = num_cores * blocks_per_core
    needs_mask = grid_blocks > full_blocks

    src2d = src_f.reshape(rows, LANES)
    tar2d = tar_f.reshape(rows, LANES)

    def in_map(c, i):
        # Clamp so a phantom block (odd split) never issues an OOB-start DMA;
        # its contribution is fully masked out inside the kernel.
        return (jnp.minimum(c * blocks_per_core + i, last_block), 0)

    kernel = functools.partial(
        _hv_loss_kernel,
        block_rows=block_rows, chunk_rows=chunk_rows, n_chunks=n_chunks,
        rows_valid=rows, full_blocks=full_blocks,
        blocks_per_core=blocks_per_core, needs_mask=needs_mask)

    in_bytes = n * (jnp.dtype(src.dtype).itemsize + jnp.dtype(tar.dtype).itemsize)
    cost = pl.CostEstimate(flops=7 * n, transcendentals=0, bytes_accessed=in_bytes)

    parts = pl.pallas_call(
        kernel,
        out_shape=jax.ShapeDtypeStruct((num_cores, 4 * SUB, LANES), jnp.float32),
        grid_spec=pltpu.PrefetchScalarGridSpec(
            num_scalar_prefetch=0,
            grid=(num_cores, blocks_per_core),
            in_specs=[pl.BlockSpec((block_rows, LANES), in_map),
                      pl.BlockSpec((block_rows, LANES), in_map)],
            out_specs=pl.BlockSpec((1, 4 * SUB, LANES), lambda c, i: (c, 0, 0)),
        ),
        compiler_params=pltpu.CompilerParams(
            dimension_semantics=("parallel", "arbitrary"),
            vmem_limit_bytes=32 * 1024 * 1024,
        ),
        cost_estimate=cost,
    )(src2d, tar2d)

    # Tiny final combine: one cross-lane reduce per partial + 5 flops.
    tmin = jnp.min(parts[:, 0 * SUB:1 * SUB, :])
    tmax = jnp.max(parts[:, 1 * SUB:2 * SUB, :])
    sum_d2 = jnp.sum(parts[:, 2 * SUB:3 * SUB, :])
    sum_td2 = jnp.sum(parts[:, 3 * SUB:4 * SUB, :])

    # loss = mean(((t - tmin)/(tmax - tmin)*9 + 1) * d^2)
    #      = (9/(tmax - tmin) * (S_td2 - tmin*S_d2) + S_d2) / n
    # tmax == tmin -> inf/NaN, matching the PyTorch reference.
    scale = jnp.float32(9.0) / (tmax - tmin)
    return (scale * (sum_td2 - tmin * sum_d2) + sum_d2) / jnp.float32(n)


def hv_loss_ref(src, tar):
    """Pure-JAX reference (mirrors the PyTorch forward)."""
    src = jnp.asarray(src, jnp.float32)
    tar = jnp.asarray(tar, jnp.float32)
    w = (tar - tar.min()) / (tar.max() - tar.min()) * 9.0 + 1.0
    return jnp.mean(w * (src - tar) ** 2)


def _check(shape, key):
    k1, k2 = jax.random.split(key)
    src = jax.random.normal(k1, shape, dtype=jnp.float32)
    tar = jax.random.normal(k2, shape, dtype=jnp.float32) * 2.0 + 0.5
    loss = jax.block_until_ready(hv_loss(src, tar))
    ref = jax.block_until_ready(hv_loss_ref(src, tar))
    assert jnp.allclose(loss, ref, rtol=1e-4, atol=1e-6), (shape, loss, ref)


if __name__ == "__main__":
    key = jax.random.PRNGKey(0)
    k0, k1, k2 = jax.random.split(key, 3)

    # Main small NCHW case (single block, mask-free path).
    _check((2, 4, 16, 16), k0)
    # Ragged flat length (exercises lane-tail padding + masked last block).
    _check((3, 5, 7, 11), k1)
    # Multi-block case (exercises fori_loop chunking, 2-way core split, mask).
    _check((2, 4, 128, 130), k2)

    print("KERNEL_OK")
</pallas_src>

<mosaic_0001>
module attributes {stable_mosaic.version = 11 : i64} {
  func.func @_hv_loss_kernel(%arg0: i32, %arg1: i32, %arg2: memref<16x128xf32, #tpu.memory_space<vmem>>, %arg3: memref<16x128xf32, #tpu.memory_space<vmem>>, %arg4: memref<1x32x128xf32, #tpu.memory_space<vmem>>) attributes {dimension_semantics = [#tpu.dimension_semantics<parallel>, #tpu.dimension_semantics<arbitrary>], iteration_bounds = array<i64: 1, 1>, scalar_prefetch = 0 : i64, scratch_operands = 0 : i64, tpu.core_type = #tpu.core_type<tc>, window_params = [{transform_indices = @transform_0, window_bounds = array<i64: 16, 128>}, {transform_indices = @transform_1, window_bounds = array<i64: 16, 128>}, {transform_indices = @transform_2, window_bounds = array<i64: 1, 32, 128>}]} {
    %c0_i32 = arith.constant 0 : i32
    %0 = arith.cmpi eq, %arg1, %c0_i32 : i32
    %1 = arith.extui %0 : i1 to i32
    %c0_i32_0 = arith.constant 0 : i32
    %2 = arith.cmpi ne, %1, %c0_i32_0 : i32
    scf.if %2 {
      %cst_32 = arith.constant 0x7F800000 : f32
      %48 = vector.broadcast %cst_32 : f32 to vector<8x128xf32>
      %c0_33 = arith.constant 0 : index
      %c0_34 = arith.constant 0 : index
      %c0_35 = arith.constant 0 : index
      %49 = vector.load %arg4[%c0_33, %c0_34, %c0_35] : memref<1x32x128xf32, #tpu.memory_space<vmem>>, vector<1x8x128xf32>
      %50 = vector.shape_cast %49 : vector<1x8x128xf32> to vector<8x128xf32>
      %51 = vector.shape_cast %48 : vector<8x128xf32> to vector<1x8x128xf32>
      tpu.vector_store %arg4[%c0_33, %c0_34, %c0_35], %51 {strides = array<i32>} : memref<1x32x128xf32, #tpu.memory_space<vmem>>, vector<1x8x128xf32>,
      %cst_36 = arith.constant 0xFF800000 : f32
      %52 = vector.broadcast %cst_36 : f32 to vector<8x128xf32>
      %c0_37 = arith.constant 0 : index
      %c8_38 = arith.constant 8 : index
      %c0_39 = arith.constant 0 : index
      %53 = vector.load %arg4[%c0_37, %c8_38, %c0_39] : memref<1x32x128xf32, #tpu.memory_space<vmem>>, vector<1x8x128xf32>
      %54 = vector.shape_cast %53 : vector<1x8x128xf32> to vector<8x128xf32>
      %55 = vector.shape_cast %52 : vector<8x128xf32> to vector<1x8x128xf32>
      tpu.vector_store %arg4[%c0_37, %c8_38, %c0_39], %55 {strides = array<i32>} : memref<1x32x128xf32, #tpu.memory_space<vmem>>, vector<1x8x128xf32>,
      %cst_40 = arith.constant 0.000000e+00 : f32
      %56 = vector.broadcast %cst_40 : f32 to vector<8x128xf32>
      %c0_41 = arith.constant 0 : index
      %c16_42 = arith.constant 16 : index
      %c0_43 = arith.constant 0 : index
      %57 = vector.load %arg4[%c0_41, %c16_42, %c0_43] : memref<1x32x128xf32, #tpu.memory_space<vmem>>, vector<1x8x128xf32>
      %58 = vector.shape_cast %57 : vector<1x8x128xf32> to vector<8x128xf32>
      %59 = vector.shape_cast %56 : vector<8x128xf32> to vector<1x8x128xf32>
      tpu.vector_store %arg4[%c0_41, %c16_42, %c0_43], %59 {strides = array<i32>} : memref<1x32x128xf32, #tpu.memory_space<vmem>>, vector<1x8x128xf32>,
      %cst_44 = arith.constant 0.000000e+00 : f32
      %60 = vector.broadcast %cst_44 : f32 to vector<8x128xf32>
      %c0_45 = arith.constant 0 : index
      %c24_46 = arith.constant 24 : index
      %c0_47 = arith.constant 0 : index
      %61 = vector.load %arg4[%c0_45, %c24_46, %c0_47] : memref<1x32x128xf32, #tpu.memory_space<vmem>>, vector<1x8x128xf32>
      %62 = vector.shape_cast %61 : vector<1x8x128xf32> to vector<8x128xf32>
      %63 = vector.shape_cast %60 : vector<8x128xf32> to vector<1x8x128xf32>
      tpu.vector_store %arg4[%c0_45, %c24_46, %c0_47], %63 {strides = array<i32>} : memref<1x32x128xf32, #tpu.memory_space<vmem>>, vector<1x8x128xf32>,
    } else {
    }
    %cst = arith.constant 0x7F800000 : f32
    %3 = vector.broadcast %cst : f32 to vector<8x128xf32>
    %cst_1 = arith.constant 0xFF800000 : f32
    %4 = vector.broadcast %cst_1 : f32 to vector<8x128xf32>
    %cst_2 = arith.constant 0.000000e+00 : f32
    %5 = vector.broadcast %cst_2 : f32 to vector<8x128xf32>
    %cst_3 = arith.constant 0.000000e+00 : f32
    %6 = vector.broadcast %cst_3 : f32 to vector<8x128xf32>
    %c0 = arith.constant 0 : index
    %c0_4 = arith.constant 0 : index
    %7 = vector.load %arg2[%c0, %c0_4] : memref<16x128xf32, #tpu.memory_space<vmem>>, vector<16x128xf32>
    %c0_5 = arith.constant 0 : index
    %c0_6 = arith.constant 0 : index
    %8 = vector.load %arg3[%c0_5, %c0_6] : memref<16x128xf32, #tpu.memory_space<vmem>>, vector<16x128xf32>
    %9 = arith.subf %7, %8 : vector<16x128xf32>
    %10 = arith.mulf %9, %9 : vector<16x128xf32>
    %11 = arith.mulf %8, %10 : vector<16x128xf32>
    %12 = vector.shape_cast %8 : vector<16x128xf32> to vector<2x8x128xf32>
    %13 = vector.shape_cast %8 : vector<16x128xf32> to vector<2x8x128xf32>
    %14 = vector.shape_cast %10 : vector<16x128xf32> to vector<2x8x128xf32>
    %15 = vector.shape_cast %11 : vector<16x128xf32> to vector<2x8x128xf32>
    %cst_7 = arith.constant dense<0x7F800000> : vector<8x128xf32>
    %16 = vector.multi_reduction <minimumf>, %12, %cst_7 [0] : vector<2x8x128xf32> to vector<8x128xf32>
    %17 = arith.minimumf %3, %16 : vector<8x128xf32>
    %cst_8 = arith.constant dense<0xFF800000> : vector<8x128xf32>
    %18 = vector.multi_reduction <maximumf>, %13, %cst_8 [0] : vector<2x8x128xf32> to vector<8x128xf32>
    %19 = arith.maximumf %4, %18 : vector<8x128xf32>
    %cst_9 = arith.constant dense<0.000000e+00> : vector<8x128xf32>
    %20 = vector.multi_reduction <add>, %14, %cst_9 [0] : vector<2x8x128xf32> to vector<8x128xf32>
    %21 = arith.addf %5, %20 : vector<8x128xf32>
    %cst_10 = arith.constant dense<0.000000e+00> : vector<8x128xf32>
    %22 = vector.multi_reduction <add>, %15, %cst_10 [0] : vector<2x8x128xf32> to vector<8x128xf32>
    %23 = arith.addf %6, %22 : vector<8x128xf32>
    %c0_11 = arith.constant 0 : index
    %c0_12 = arith.constant 0 : index
    %c0_13 = arith.constant 0 : index
    %24 = vector.load %arg4[%c0_11, %c0_12, %c0_13] : memref<1x32x128xf32, #tpu.memory_space<vmem>>, vector<1x8x128xf32>
    %25 = vector.shape_cast %24 : vector<1x8x128xf32> to vector<8x128xf32>
    %26 = arith.minimumf %25, %17 : vector<8x128xf32>
    %c0_14 = arith.constant 0 : index
    %c0_15 = arith.constant 0 : index
    %c0_16 = arith.constant 0 : index
    %27 = vector.load %arg4[%c0_14, %c0_15, %c0_16] : memref<1x32x128xf32, #tpu.memory_space<vmem>>, vector<1x8x128xf32>
    %28 = vector.shape_cast %27 : vector<1x8x128xf32> to vector<8x128xf32>
    %29 = vector.shape_cast %26 : vector<8x128xf32> to vector<1x8x128xf32>
    tpu.vector_store %arg4[%c0_14, %c0_15, %c0_16], %29 {strides = array<i32>} : memref<1x32x128xf32, #tpu.memory_space<vmem>>, vector<1x8x128xf32>,
    %c0_17 = arith.constant 0 : index
    %c8 = arith.constant 8 : index
    %c0_18 = arith.constant 0 : index
    %30 = vector.load %arg4[%c0_17, %c8, %c0_18] : memref<1x32x128xf32, #tpu.memory_space<vmem>>, vector<1x8x128xf32>
    %31 = vector.shape_cast %30 : vector<1x8x128xf32> to vector<8x128xf32>
    %32 = arith.maximumf %31, %19 : vector<8x128xf32>
    %c0_19 = arith.constant 0 : index
    %c8_20 = arith.constant 8 : index
    %c0_21 = arith.constant 0 : index
    %33 = vector.load %arg4[%c0_19, %c8_20, %c0_21] : memref<1x32x128xf32, #tpu.memory_space<vmem>>, vector<1x8x128xf32>
    %34 = vector.shape_cast %33 : vector<1x8x128xf32> to vector<8x128xf32>
    %35 = vector.shape_cast %32 : vector<8x128xf32> to vector<1x8x128xf32>
    tpu.vector_store %arg4[%c0_19, %c8_20, %c0_21], %35 {strides = array<i32>} : memref<1x32x128xf32, #tpu.memory_space<vmem>>, vector<1x8x128xf32>,
    %c0_22 = arith.constant 0 : index
    %c16 = arith.constant 16 : index
    %c0_23 = arith.constant 0 : index
    %36 = vector.load %arg4[%c0_22, %c16, %c0_23] : memref<1x32x128xf32, #tpu.memory_space<vmem>>, vector<1x8x128xf32>
    %37 = vector.shape_cast %36 : vector<1x8x128xf32> to vector<8x128xf32>
    %38 = arith.addf %37, %21 : vector<8x128xf32>
    %c0_24 = arith.constant 0 : index
    %c16_25 = arith.constant 16 : index
    %c0_26 = arith.constant 0 : index
    %39 = vector.load %arg4[%c0_24, %c16_25, %c0_26] : memref<1x32x128xf32, #tpu.memory_space<vmem>>, vector<1x8x128xf32>
    %40 = vector.shape_cast %39 : vector<1x8x128xf32> to vector<8x128xf32>
    %41 = vector.shape_cast %38 : vector<8x128xf32> to vector<1x8x128xf32>
    tpu.vector_store %arg4[%c0_24, %c16_25, %c0_26], %41 {strides = array<i32>} : memref<1x32x128xf32, #tpu.memory_space<vmem>>, vector<1x8x128xf32>,
    %c0_27 = arith.constant 0 : index
    %c24 = arith.constant 24 : index
    %c0_28 = arith.constant 0 : index
    %42 = vector.load %arg4[%c0_27, %c24, %c0_28] : memref<1x32x128xf32, #tpu.memory_space<vmem>>, vector<1x8x128xf32>
    %43 = vector.shape_cast %42 : vector<1x8x128xf32> to vector<8x128xf32>
    %44 = arith.addf %43, %23 : vector<8x128xf32>
    %c0_29 = arith.constant 0 : index
    %c24_30 = arith.constant 24 : index
    %c0_31 = arith.constant 0 : index
    %45 = vector.load %arg4[%c0_29, %c24_30, %c0_31] : memref<1x32x128xf32, #tpu.memory_space<vmem>>, vector<1x8x128xf32>
    %46 = vector.shape_cast %45 : vector<1x8x128xf32> to vector<8x128xf32>
    %47 = vector.shape_cast %44 : vector<8x128xf32> to vector<1x8x128xf32>
    tpu.vector_store %arg4[%c0_29, %c24_30, %c0_31], %47 {strides = array<i32>} : memref<1x32x128xf32, #tpu.memory_space<vmem>>, vector<1x8x128xf32>,
    return
  }
  func.func @transform_0(%arg0: i32, %arg1: i32) -> (i32, i32) {
    %c1_i32 = arith.constant 1 : i32
    %0 = arith.muli %arg0, %c1_i32 : i32
    %1 = arith.addi %0, %arg1 : i32
    %c0_i32 = arith.constant 0 : i32
    %2 = arith.minsi %1, %c0_i32 : i32
    %c0_i32_0 = arith.constant 0 : i32
    %c0_i32_1 = arith.constant 0 : i32
    return %2, %c0_i32_0 : i32, i32
  }
  func.func @transform_1(%arg0: i32, %arg1: i32) -> (i32, i32) {
    %c1_i32 = arith.constant 1 : i32
    %0 = arith.muli %arg0, %c1_i32 : i32
    %1 = arith.addi %0, %arg1 : i32
    %c0_i32 = arith.constant 0 : i32
    %2 = arith.minsi %1, %c0_i32 : i32
    %c0_i32_0 = arith.constant 0 : i32
    %c0_i32_1 = arith.constant 0 : i32
    return %2, %c0_i32_0 : i32, i32
  }
  func.func @transform_2(%arg0: i32, %arg1: i32) -> (i32, i32, i32) {
    %c0_i32 = arith.constant 0 : i32
    %c0_i32_0 = arith.constant 0 : i32
    %c0_i32_1 = arith.constant 0 : i32
    return %arg0, %c0_i32, %c0_i32_0 : i32, i32, i32
  }
}

</mosaic_0001>

<bundles_post_ra>
// kernel: hv_loss.1
= control target key start
LH: loop header
LB: loop body
LE: loop exit
PB: predicated region body
PF: predicated region fallthrough
CT: control target
= control target key end

     0   :  { %s169_s1 = inlined_call_operand.vmem [shape: f32[16,128], index: 1, kind: input, shape index: {}]   ;;  %s170_s0 = inlined_call_operand.vmem [shape: f32[16,128], index: 0, kind: input, shape index: {}]   ;;  %s171_s2 = inlined_call_operand.vmem [shape: f32[1,32,128], index: 2, kind: output, shape index: {}]  }
   0x1   :  { %v85_v0 = vld [vmem:[%s169_s1] sm:$0xff]  ;;  %v86_v1 = vld [vmem:[%s169_s1 + $0x8] sm:$0xff] }
   0x2   :  { %v83_v2 = vld [vmem:[%s170_s0] sm:$0xff]  ;;  %v93_v3 = vmin.f32 %v85_v0, %v86_v1  ;;  %v94_v4 = vmax.f32 %v85_v0, %v86_v1  ;;  %v84_v5 = vld [vmem:[%s170_s0 + $0x8] sm:$0xff] }
   0x3   :  { %v87_v6 = vsub.f32 %v83_v2, %v85_v0  ;;  %v88_v7 = vsub.f32 %v84_v5, %v86_v1 }
   0x4   :  { %101 = vst [vmem:[%s171_s2] sm:$0xff] %v93_v3  ;;  %104 = vst [vmem:[%s171_s2 + $0x8] sm:$0xff] %v94_v4 }
   0x5   :  { %v89_v8 = vmul.f32 %v87_v6, %v87_v6  ;;  %v90_v9 = vmul.f32 %v88_v7, %v88_v7 }
   0x7   :  { %v91_v10 = vmul.f32 %v89_v8, %v85_v0  ;;  %v95_v11 = vadd.f32 %v90_v9, %v89_v8  ;;  %v92_v12 = vmul.f32 %v90_v9, %v86_v1 }
   0x9   :  { %v97_v13 = vadd.f32 %v92_v12, %v91_v10  ;;  %107 = vst [vmem:[%s171_s2 + $0x10] sm:$0xff] %v95_v11 }
   0xb   :  { %110 = vst [vmem:[%s171_s2 + $0x18] sm:$0xff] %v97_v13 }

</bundles_post_ra>
